<compile_context>
chip_gen: v5e
topology: v5e:2x2
jax: 0.10.0
libtpu: 0.0.40
codegen_flags: <defaults>
</compile_context>

<pallas_src>
import jax
import jax.numpy as jnp
from jax.experimental import pallas as pl
from jax.experimental.pallas import tpu as pltpu

_LANE = 128  # TPU lane width; each head's vocab dim is padded to a multiple of this.


def _round_up(x, m):
    return (x + m - 1) // m * m


def _dual_fused_kernel(xrx_ref, xdx_ref, w1_ref, b1_ref, w2_ref, b2_ref, o_ref):
    """Both prediction heads fused via block-diagonal weights.

    xrx_ref: [B, H]          rx_inputs  (feeds predict_dx)
    xdx_ref: [B, H]          dx_inputs  (feeds predict_rx)
    w1_ref : [2H, 2H]        blockdiag(W1_dx.T, W1_rx.T)
    b1_ref : [1, 2H]         [b1_dx | b1_rx]
    w2_ref : [2H, 2*N_PAD]   blockdiag(padded W2_dx.T, padded W2_rx.T)
    b2_ref : [1, 2*N_PAD]    padded [b2_dx | b2_rx]
    o_ref  : [B, 2*N_PAD]    lane-dense output slab
    """
    x_cat = jnp.concatenate([xrx_ref[...], xdx_ref[...]], axis=-1)  # (B, 2H)
    h = jnp.dot(x_cat, w1_ref[...], preferred_element_type=jnp.float32)
    h = jnp.maximum(h + b1_ref[...], 0.0)                           # bias + ReLU in f32
    y = jnp.dot(h, w2_ref[...], preferred_element_type=jnp.float32)
    o_ref[...] = (y + b2_ref[...]).astype(o_ref.dtype)


def init_params(key, hidden_size, dx_voc_size, rx_voc_size, dtype=jnp.float32):
    """PyTorch-style parameters: Linear weight (out_features, in_features), bias (out_features,)."""
    ks = jax.random.split(key, 8)
    scale = 0.02

    def lin(kw, kb, out_f, in_f):
        w = scale * jax.random.normal(kw, (out_f, in_f), dtype)
        b = scale * jax.random.normal(kb, (out_f,), dtype)
        return w, b

    dx_w1, dx_b1 = lin(ks[0], ks[1], hidden_size, hidden_size)
    dx_w2, dx_b2 = lin(ks[2], ks[3], dx_voc_size, hidden_size)
    rx_w1, rx_b1 = lin(ks[4], ks[5], hidden_size, hidden_size)
    rx_w2, rx_b2 = lin(ks[6], ks[7], rx_voc_size, hidden_size)

    return {
        "predict_dx": (dx_w1, dx_b1, dx_w2, dx_b2),
        "predict_rx": (rx_w1, rx_b1, rx_w2, rx_b2),
    }


def prepare_params(params, hidden_size, dx_voc_size, rx_voc_size):
    """One-time packing: pre-transpose weights and build block-diagonal slabs
    so the per-call kernel is exactly two plain x @ W matmuls."""
    H = hidden_size
    n_pad = _round_up(max(dx_voc_size, rx_voc_size), _LANE)

    dx_w1, dx_b1, dx_w2, dx_b2 = params["predict_dx"]
    rx_w1, rx_b1, rx_w2, rx_b2 = params["predict_rx"]
    dtype = dx_w1.dtype

    # Layer 1: x_cat = [rx | dx], so the top-left block is predict_dx's weight.
    w1bd = jnp.zeros((2 * H, 2 * H), dtype)
    w1bd = w1bd.at[:H, :H].set(dx_w1.T)
    w1bd = w1bd.at[H:, H:].set(rx_w1.T)
    b1cat = jnp.concatenate([dx_b1, rx_b1]).reshape(1, 2 * H)

    # Layer 2: lane-dense, zero-padded to n_pad per head (zeros are sliced away).
    w2bd = jnp.zeros((2 * H, 2 * n_pad), dtype)
    w2bd = w2bd.at[:H, :dx_voc_size].set(dx_w2.T)
    w2bd = w2bd.at[H:, n_pad:n_pad + rx_voc_size].set(rx_w2.T)
    b2cat = jnp.zeros((1, 2 * n_pad), dtype)
    b2cat = b2cat.at[0, :dx_voc_size].set(dx_b2)
    b2cat = b2cat.at[0, n_pad:n_pad + rx_voc_size].set(rx_b2)

    return {
        "w1": w1bd,            # (2H, 2H)
        "b1": b1cat,           # (1, 2H)
        "w2": w2bd,            # (2H, 2*N_PAD)
        "b2": b2cat,           # (1, 2*N_PAD)
        "n_pad": n_pad,
        "dx_voc": dx_voc_size,
        "rx_voc": rx_voc_size,
    }


def dual_predict(dx_inputs, rx_inputs, prepared):
    """DualPredict.forward — note the cross-over: predict_dx consumes
    rx_inputs, predict_rx consumes dx_inputs.  Single grid-less pallas_call."""
    B, H = dx_inputs.shape
    n_pad = prepared["n_pad"]
    w1, b1, w2, b2 = prepared["w1"], prepared["b1"], prepared["w2"], prepared["b2"]

    flops = 2 * B * (2 * H) * (2 * H) + 2 * B * (2 * H) * (2 * n_pad)
    bytes_accessed = (
        sum(int(a.size) * a.dtype.itemsize for a in (dx_inputs, rx_inputs, w1, b1, w2, b2))
        + B * 2 * n_pad * dx_inputs.dtype.itemsize
    )

    vmem = pl.BlockSpec(memory_space=pltpu.MemorySpace.VMEM)  # whole-array block in VMEM
    out = pl.pallas_call(
        _dual_fused_kernel,
        out_shape=jax.ShapeDtypeStruct((B, 2 * n_pad), dx_inputs.dtype),
        in_specs=[vmem] * 6,
        out_specs=vmem,
        cost_estimate=pl.CostEstimate(
            flops=flops, transcendentals=0, bytes_accessed=bytes_accessed),
    )(rx_inputs, dx_inputs, w1, b1, w2, b2)

    dx_out = out[:, :prepared["dx_voc"]]
    rx_out = out[:, n_pad:n_pad + prepared["rx_voc"]]
    return dx_out, rx_out


def _reference(dx_inputs, rx_inputs, params):
    def mlp(x, w1, b1, w2, b2):
        h = jnp.maximum(x @ w1.T + b1, 0.0)
        return h @ w2.T + b2
    return (mlp(rx_inputs, *params["predict_dx"]),
            mlp(dx_inputs, *params["predict_rx"]))


if __name__ == "__main__":
    B, H = 8, 32
    DX_VOC, RX_VOC = 16, 24

    key = jax.random.PRNGKey(0)
    k_dx, k_rx, k_params = jax.random.split(key, 3)

    dx_inputs = jax.random.normal(k_dx, (B, H), jnp.float32)
    rx_inputs = jax.random.normal(k_rx, (B, H), jnp.float32)
    params = init_params(k_params, H, DX_VOC, RX_VOC)
    prepared = prepare_params(params, H, DX_VOC, RX_VOC)

    dx_out, rx_out = dual_predict(dx_inputs, rx_inputs, prepared)
    jax.block_until_ready((dx_out, rx_out))

    ref_dx, ref_rx = _reference(dx_inputs, rx_inputs, params)
    assert dx_out.shape == (B, DX_VOC)
    assert rx_out.shape == (B, RX_VOC)
    assert jnp.allclose(dx_out, ref_dx, atol=1e-5, rtol=1e-5)
    assert jnp.allclose(rx_out, ref_rx, atol=1e-5, rtol=1e-5)

    print("KERNEL_OK")
</pallas_src>

<mosaic_0001>
module attributes {stable_mosaic.version = 11 : i64} {
  func.func @_dual_fused_kernel(%arg0: memref<8x32xf32, #tpu.memory_space<vmem>>, %arg1: memref<8x32xf32, #tpu.memory_space<vmem>>, %arg2: memref<64x64xf32, #tpu.memory_space<vmem>>, %arg3: memref<1x64xf32, #tpu.memory_space<vmem>>, %arg4: memref<64x256xf32, #tpu.memory_space<vmem>>, %arg5: memref<1x256xf32, #tpu.memory_space<vmem>>, %arg6: memref<8x256xf32, #tpu.memory_space<vmem>>) attributes {dimension_semantics = [], scalar_prefetch = 0 : i64, scratch_operands = 0 : i64, tpu.core_type = #tpu.core_type<tc>} {
    %c0 = arith.constant 0 : index
    %c0_0 = arith.constant 0 : index
    %0 = vector.load %arg0[%c0, %c0_0] : memref<8x32xf32, #tpu.memory_space<vmem>>, vector<8x32xf32>
    %c0_1 = arith.constant 0 : index
    %c0_2 = arith.constant 0 : index
    %1 = vector.load %arg1[%c0_1, %c0_2] : memref<8x32xf32, #tpu.memory_space<vmem>>, vector<8x32xf32>
    %2 = tpu.concatenate %0, %1 in 1 : vector<8x32xf32>, vector<8x32xf32> -> vector<8x64xf32>
    %c0_3 = arith.constant 0 : index
    %c0_4 = arith.constant 0 : index
    %3 = vector.load %arg2[%c0_3, %c0_4] : memref<64x64xf32, #tpu.memory_space<vmem>>, vector<64x64xf32>
    %cst = arith.constant dense<0.000000e+00> : vector<8x64xf32>
    %4 = tpu.matmul %2, %3, %cst {dimension_numbers = #tpu.dot_dimension_numbers<[1], [0], [0], [1], [0, 0, 1, 1], [], []>} : vector<8x64xf32>, vector<64x64xf32>, vector<8x64xf32> -> vector<8x64xf32>
    %c0_5 = arith.constant 0 : index
    %c0_6 = arith.constant 0 : index
    %5 = vector.load %arg3[%c0_5, %c0_6] : memref<1x64xf32, #tpu.memory_space<vmem>>, vector<1x64xf32>
    %6 = vector.broadcast %5 : vector<1x64xf32> to vector<8x64xf32>
    %7 = arith.addf %4, %6 : vector<8x64xf32>
    %cst_7 = arith.constant 0.000000e+00 : f32
    %8 = vector.broadcast %cst_7 : f32 to vector<8x64xf32>
    %9 = arith.maximumf %7, %8 : vector<8x64xf32>
    %c0_8 = arith.constant 0 : index
    %c0_9 = arith.constant 0 : index
    %10 = vector.load %arg4[%c0_8, %c0_9] : memref<64x256xf32, #tpu.memory_space<vmem>>, vector<64x256xf32>
    %cst_10 = arith.constant dense<0.000000e+00> : vector<8x256xf32>
    %11 = tpu.matmul %9, %10, %cst_10 {dimension_numbers = #tpu.dot_dimension_numbers<[1], [0], [0], [1], [0, 0, 1, 1], [], []>} : vector<8x64xf32>, vector<64x256xf32>, vector<8x256xf32> -> vector<8x256xf32>
    %c0_11 = arith.constant 0 : index
    %c0_12 = arith.constant 0 : index
    %12 = vector.load %arg5[%c0_11, %c0_12] : memref<1x256xf32, #tpu.memory_space<vmem>>, vector<1x256xf32>
    %13 = vector.broadcast %12 : vector<1x256xf32> to vector<8x256xf32>
    %14 = arith.addf %11, %13 : vector<8x256xf32>
    %c0_13 = arith.constant 0 : index
    %c0_14 = arith.constant 0 : index
    %15 = vector.load %arg6[%c0_13, %c0_14] : memref<8x256xf32, #tpu.memory_space<vmem>>, vector<8x256xf32>
    tpu.vector_store %arg6[%c0_13, %c0_14], %14 {strides = array<i32>} : memref<8x256xf32, #tpu.memory_space<vmem>>, vector<8x256xf32>,
    return
  }
}

</mosaic_0001>

<bundles_post_ra>
// kernel: tpu_custom_call.1
= control target key start
LH: loop header
LB: loop body
LE: loop exit
PB: predicated region body
PF: predicated region fallthrough
CT: control target
= control target key end

     0   :  { %11 = vsyncpa [#allocation3], 0  ;;  %s425_s0 = inlined_call_operand.hbm [shape: f32[8,32], index: 0, kind: input, shape index: {}]   ;;  %s426_s1 = inlined_call_operand.hbm [shape: f32[8,32], index: 1, kind: input, shape index: {}]   ;;  %s427_s2 = inlined_call_operand.hbm [shape: f32[64,64], index: 2, kind: input, shape index: {}]   ;;  %s428_s3 = inlined_call_operand.vmem [shape: f32[1,64], index: 3, kind: input, shape index: {}]   ;;  %s429_s4 = inlined_call_operand.hbm [shape: f32[64,256], index: 4, kind: input, shape index: {}]   ;;  %s430_s5 = inlined_call_operand.vmem [shape: f32[1,256], index: 5, kind: input, shape index: {}]   ;;  %s431_s6 = inlined_call_operand.hbm [shape: f32[8,256], index: 6, kind: output, shape index: {}]  }
   0x1   :  { %12 = vsyncpa [#allocation6], 0 }
   0x2   :  { %13 = vsyncpa [#allocation9], 0  ;;  %s31_s23 = sshll.u32 %s426_s1, 4  ;;  %s32_s23 = int_to_ptr.hbm [resolvable:$true] %s31_s23 }
   0x3   :  { %14 = vsyncpa [#allocation4], 0  ;;  %s356_s24 = smov [#allocation5]   ;;  %s20_s28 = sshll.u32 %s425_s0, 4  ;;  %s21_s28 = int_to_ptr.hbm [resolvable:$true] %s20_s28 }
   0x4   :  { %s33_s25 = sshll.u32 %s356_s24, 4  ;;  %s357_s29 = smov [#allocation2]   ;;  %s34_s25 = int_to_ptr.vmem [resolvable:$true] %s33_s25 }
   0x5   :  { %36 = dma.hbm_to_vmem [thread:$0]  %s32_s23, 128, %s34_s25, [#allocation6]  }
   0x6   :  { %s22_s30 = sshll.u32 %s357_s29, 4  ;;  %s41_s9 = sshll.u32 %s427_s2, 4  ;;  %s23_s30 = int_to_ptr.vmem [resolvable:$true] %s22_s30  ;;  %s42_s9 = int_to_ptr.hbm [resolvable:$true] %s41_s9 }
   0x7   :  { %25 = dma.hbm_to_vmem [thread:$0]  %s21_s28, 128, %s23_s30, [#allocation3]  }
   0x8   :  { %s358_s1 = smov [#allocation7]   ;;  %s56_s13 = sshll.u32 %s429_s4, 4  ;;  %s57_s13 = int_to_ptr.hbm [resolvable:$true] %s56_s13 }
   0x9   :  { %s43_s10 = sshll.u32 %s358_s1, 4  ;;  %s359_s14 = smov 128   ;;  %s44_s10 = int_to_ptr.vmem [resolvable:$true] %s43_s10 }
   0xa   :  { %s360_s0 = smov 8   ;;  %s361_s15 = smov [#allocation8]  }
   0xb   :  { %49 = dma.hbm_to_vmem [thread:$0]  %s42_s9, 1024, %s44_s10, [#allocation6], %s359_s14, %s359_s14, %s360_s0  }
   0xc   :  { %s58_s16 = sshll.u32 %s361_s15, 4  ;;  %s362_s17 = smov 256   ;;  %s59_s16 = int_to_ptr.vmem [resolvable:$true] %s58_s16 }
   0xd   :  { %s363_s18 = smov 16  }
   0xe   :  { %64 = dma.hbm_to_vmem [thread:$0]  %s57_s13, 2048, %s59_s16, [#allocation9], %s362_s17, %s362_s17, %s363_s18  }
   0xf   :  { %348 = dma.done.wait [#allocation3], 128  }
  0x10   :  { %349 = vsyncadd [#allocation3], 4294967168 }
  0x11   :  { %350 = dma.done.wait [#allocation6], 1152  }
  0x12   :  { %351 = vsyncadd [#allocation6], 4294966144 }
  0x13   :  { %352 = dma.done.wait [#allocation9], 2048  }
  0x14   :  { %353 = vsyncadd [#allocation9], 4294965248  ;;  %v84_v0 = vld [vmem:[#allocation5] sm:$0xff]  ;;  %v97_v2 = vld [vmem:[#allocation7 + $0x30] sm:$0xff]  ;;  %s364_s2 = smov 32   ;;  %vm89_vm0 = vcmask 261120  }
  0x15   :  { %v98_v1 = vld [vmem:[#allocation7 + $0x38] sm:$0xff]  ;;  %86 = vrot.lane.b32.xlu0 %v84_v0, %s364_s2  ;;  %v96_v3 = vld [vmem:[#allocation7 + $0x28] sm:$0xff]  ;;  %v95_v4 = vld [vmem:[#allocation7 + $0x20] sm:$0xff]  ;;  %vm103_vm1 = vcmask 523264   ;;  %s365_s22 = smov [#allocation10]   ;;  %s202_s25 = sshll.u32 %s431_s6, 4  ;;  %s203_s25 = int_to_ptr.hbm [resolvable:$true] %s202_s25 }
  0x16   :  { %115 = vmatpush.msra.mxu0 %v98_v1  ;;  %v94_v5 = vld [vmem:[#allocation7 + $0x18] sm:$0xff]  ;;  %v93_v6 = vld [vmem:[#allocation7 + $0x10] sm:$0xff]  ;;  %v92_v7 = vld [vmem:[#allocation7 + $0x8] sm:$0xff]  ;;  %s200_s23 = sshll.u32 %s365_s22, 4  ;;  %s201_s23 = int_to_ptr.vmem [resolvable:$true] %s200_s23 }
  0x17   :  { %v91_v8 = vld [vmem:[#allocation7] sm:$0xff]  ;;  %v142_v9 = vld [vmem:[#allocation8 + $0x70] sm:$0xff]  ;;  %v143_v10 = vld [vmem:[#allocation8 + $0x78] sm:$0xff] }
  0x18   :  { %116 = vmatpush.msra.mxu0 %v97_v2  ;;  %v140_v11 = vld [vmem:[#allocation8 + $0x60] sm:$0xff]  ;;  %161 = vmatpush.msra.mxu1 %v142_v9  ;;  %v141_v12 = vld [vmem:[#allocation8 + $0x68] sm:$0xff]  ;;  %v138_v13 = vld [vmem:[#allocation8 + $0x50] sm:$0xff] }
  0x19   :  { %181 = vmatpush.msra.mxu2 %v143_v10  ;;  %v139_v14 = vld [vmem:[#allocation8 + $0x58] sm:$0xff]  ;;  %v136_v15 = vld [vmem:[#allocation8 + $0x40] sm:$0xff]  ;;  %v137_v16 = vld [vmem:[#allocation8 + $0x48] sm:$0xff] }
  0x1a   :  { %117 = vmatpush.msra.mxu0 %v96_v3  ;;  %162 = vmatpush.msra.mxu1 %v140_v11  ;;  %v134_v17 = vld [vmem:[#allocation8 + $0x30] sm:$0xff]  ;;  %v135_v18 = vld [vmem:[#allocation8 + $0x38] sm:$0xff]  ;;  %v132_v22 = vld [vmem:[#allocation8 + $0x20] sm:$0xff] }
  0x1b   :  { %182 = vmatpush.msra.mxu2 %v141_v12  ;;  %v83_v19 = vld [vmem:[#allocation2] sm:$0xff]  ;;  %v133_v23 = vld [vmem:[#allocation8 + $0x28] sm:$0xff]  ;;  %v131_v25 = vld [vmem:[#allocation8 + $0x18] sm:$0xff] }
  0x1c   :  { %118 = vmatpush.msra.mxu0 %v95_v4  ;;  %163 = vmatpush.msra.mxu1 %v138_v13  ;;  %v130_v24 = vld [vmem:[#allocation8 + $0x10] sm:$0xff]  ;;  %v128_v26 = vld [vmem:[#allocation8] sm:$0xff]  ;;  %v129_v27 = vld [vmem:[#allocation8 + $0x8] sm:$0xff] }
  0x1d   :  { %183 = vmatpush.msra.mxu2 %v139_v14  ;;  %v227_v28 = vld [vmem:[%s428_s3] ss:$0 sm:$0xff] }
  0x1e   :  { %119 = vmatpush.msra.mxu0 %v94_v5  ;;  %164 = vmatpush.msra.mxu1 %v136_v15  ;;  %v144_v32 = vld [vmem:[%s430_s5] sm:$0x3] }
  0x1f   :  { %184 = vmatpush.msra.mxu2 %v137_v16  ;;  %v146_v33 = vperm.slane %v144_v32, 0  ;;  %v147_v36 = vperm.slane %v144_v32, 1 }
  0x20   :  { %120 = vmatpush.msra.mxu0 %v93_v6  ;;  %165 = vmatpush.msra.mxu1 %v134_v17 }
  0x21   :  { %185 = vmatpush.msra.mxu2 %v135_v18 }
  0x22   :  { %121 = vmatpush.msra.mxu0 %v92_v7  ;;  %166 = vmatpush.msra.mxu1 %v132_v22 }
  0x23   :  { %186 = vmatpush.msra.mxu2 %v133_v23 }
  0x24   :  { %122 = vmatpush.msra.mxu0 %v91_v8  ;;  %167 = vmatpush.msra.mxu1 %v130_v24 }
  0x25   :  { %187 = vmatpush.msra.mxu2 %v131_v25 }
  0x26   :  { %168 = vmatpush.msra.mxu1 %v128_v26 }
  0x27   :  { %188 = vmatpush.msra.mxu2 %v129_v27 }
  0x87   :  { %v87_v20 = vpop.permute.xlu0 %86 }
  0x88   :  { %v90_v21 = vsel %vm89_vm0, %v83_v19, %v87_v20 }
  0x89   :  { %214 = vmatmul.msk.f32.vlgmr.msra.gmra.mxu0 %vm103_vm1, %v90_v21 }
 0x106   :  { %v124_v29 = vpop.f32.mrf.mxu0 }
 0x107   :  { %v125_v30 = vadd.f32 %v227_v28, %v124_v29 }
 0x109   :  { %v127_v31 = vmax.f32 %v125_v30, 0.0 }
 0x10b   :  { %215 = vmatmul.msk.f32.vlgmr.msra.gmra.mxu1 %vm103_vm1, %v127_v31  ;;  %216 = vmatmul.msk.f32.vlgmr.msra.gmra.mxu2 %vm103_vm1, %v127_v31 }
 0x188   :  { %v170_v34 = vpop.f32.mrf.mxu1 }
 0x189   :  { %v171_v35 = vadd.f32 %v170_v34, %v146_v33 }
 0x18b   :  { %193 = vst [vmem:[#allocation10] sm:$0xff] %v171_v35 }
 0x18e   :  { %v190_v37 = vpop.f32.mrf.mxu2 }
 0x18f   :  { %v191_v38 = vadd.f32 %v190_v37, %v147_v36 }
 0x191   :  { %194 = vst [vmem:[#allocation10 + $0x8] sm:$0xff] %v191_v38 }
 0x192   :  { %205 = dma.vmem_to_hbm [thread:$0]  %s201_s23, 256, %s203_s25, [#allocation4]  }
 0x193   :  { %354 = dma.done.wait [#allocation4], 256  }
 0x194   :  { %355 = vsyncadd [#allocation4], 4294967040 }
 0x195   :  { %210 = vsyncpa [#allocation3], 1 }
 0x196   :  { %211 = vsyncpa [#allocation6], 1 }
 0x197   :  { %212 = vsyncpa [#allocation9], 1 }
 0x198   :  { %213 = vsyncpa [#allocation4], 1 }

</bundles_post_ra>
